<compile_context>
chip_gen: v6e
topology: v6e:2x2x1
jax: 0.10.0
libtpu: 0.0.40
codegen_flags: <defaults>
</compile_context>

<pallas_src>
import jax
import jax.numpy as jnp
from jax.experimental import pallas as pl
from jax.experimental.pallas import tpu as pltpu


# ----------------------------- tiling helpers --------------------------------
def _round_up(x, m):
    return ((x + m - 1) // m) * m


def _pick_tile(dim, preferred, quantum):
    """Tile for one axis: full extent when small (always legal), otherwise the
    largest multiple of `quantum` <= preferred; caller pads to a tile multiple."""
    if dim <= preferred:
        return dim
    return max(quantum, (preferred // quantum) * quantum)


# ----------------------------- FC (tiled matmul) kernel ----------------------
def fc_kernel(x_ref, w_ref, b_ref, o_ref):
    # x: (bm, K) bf16, w: (K, bn) bf16, b: (1, bn) f32 -> o: (bm, bn) f32
    acc = jnp.dot(x_ref[...], w_ref[...], preferred_element_type=jnp.float32)
    o_ref[...] = (acc + b_ref[...]).astype(o_ref.dtype)


def fc_forward(x2d, w_t, b, *, tm=256, tn=512, out_dtype=jnp.float32):
    """y = x2d @ w_t + b, tiled over rows (M) and output columns (N).

    x2d is expected in bf16 (cast in the wrapper, not per tile).  Axes bigger
    than the preferred tile are padded up to a tile multiple and sliced back.
    NOTE: on v6e (128 MiB VMEM) tm=512 amortizes better for K=4096; v7x keeps
    the smaller defaults (64 MiB VMEM shared by 2 cores).
    """
    M, K = x2d.shape
    N = w_t.shape[-1]
    bm = _pick_tile(M, tm, 8)
    bn = _pick_tile(N, tn, 128)
    Mp, Np = _round_up(M, bm), _round_up(N, bn)
    x_p = x2d if Mp == M else jnp.pad(x2d, ((0, Mp - M), (0, 0)))
    w_p = w_t if Np == N else jnp.pad(w_t, ((0, 0), (0, Np - N)))
    b_p = b if Np == N else jnp.pad(b, ((0, 0), (0, Np - N)))

    out = pl.pallas_call(
        fc_kernel,
        grid=(Mp // bm, Np // bn),
        in_specs=[
            pl.BlockSpec((bm, K), lambda i, j: (i, 0)),
            pl.BlockSpec((K, bn), lambda i, j: (0, j)),
            pl.BlockSpec((1, bn), lambda i, j: (0, j)),
        ],
        out_specs=pl.BlockSpec((bm, bn), lambda i, j: (i, j)),
        out_shape=jax.ShapeDtypeStruct((Mp, Np), out_dtype),
        compiler_params=pltpu.CompilerParams(
            dimension_semantics=("parallel", "parallel")),
    )(x_p, w_p, b_p)
    return out[:M, :N]


# ------------------- Logits FC with fused (T,B)->(B,T) transpose -------------
def fc_logits_kernel(x_ref, w_ref, b_ref, o_ref):
    # x: (tt, B, H) bf16 time-major, w: (H, bn) bf16, b: (1, bn) f32
    # o: (B, tt, bn) f32 batch-major -- transpose fused via per-batch stores.
    B = x_ref.shape[1]
    w = w_ref[...]
    bias = b_ref[...]
    for bi in range(B):                       # static unroll over batch
        xb = x_ref[:, bi, :]                  # (tt, H) strided VMEM load
        o_ref[bi] = (jnp.dot(xb, w, preferred_element_type=jnp.float32)
                     + bias).astype(o_ref.dtype)


def fc_logits_forward(x_tbh, w_t, b, *, tt_pref=128, tn=512):
    """(T,B,H) bf16 @ (H,V) bf16 + b -> (B,T,V) f32, transpose fused in-kernel."""
    T, B, H = x_tbh.shape
    V = w_t.shape[-1]
    tt = _pick_tile(T, tt_pref, 8)
    bn = _pick_tile(V, tn, 128)
    Tp, Vp = _round_up(T, tt), _round_up(V, bn)
    x_p = x_tbh if Tp == T else jnp.pad(x_tbh, ((0, Tp - T), (0, 0), (0, 0)))
    w_p = w_t if Vp == V else jnp.pad(w_t, ((0, 0), (0, Vp - V)))
    b_p = b if Vp == V else jnp.pad(b, ((0, 0), (0, Vp - V)))

    out = pl.pallas_call(
        fc_logits_kernel,
        grid=(Tp // tt, Vp // bn),
        in_specs=[
            pl.BlockSpec((tt, B, H), lambda i, j: (i, 0, 0)),
            pl.BlockSpec((H, bn), lambda i, j: (0, j)),
            pl.BlockSpec((1, bn), lambda i, j: (0, j)),
        ],
        out_specs=pl.BlockSpec((B, tt, bn), lambda i, j: (0, i, j)),
        out_shape=jax.ShapeDtypeStruct((B, Tp, Vp), jnp.float32),
        compiler_params=pltpu.CompilerParams(
            dimension_semantics=("parallel", "parallel")),
    )(x_p, w_p, b_p)
    return out[:, :T, :V]


# ----------------------------- GRU kernel ------------------------------------
def gru_kernel(gi_ref, h0_ref, whh_ref, bhn_ref, out_ref, hn_ref, h_scr):
    # Per grid step t:
    #   gi:  (1, B, 3H) f32   precomputed x_t @ W_ih^T + (b_ih + b_hh[r,z])
    #   h0:  (B, H)     f32   (constant index -> DMA'd once)
    #   whh: (H, 3H)    bf16  recurrent weight, resident for the whole grid
    #   bhn: (1, H)     f32   n-gate slice of b_hh (stays inside r*(...))
    #   out: (1, B, H)  bf16  hidden state at step t (pipelined writeback)
    #   hn:  (B, H)     f32   final hidden (constant index -> written at end)
    t = pl.program_id(0)

    @pl.when(t == 0)
    def _():
        h_scr[...] = h0_ref[...]

    h = h_scr[...]                                        # (B, H) f32
    H = h.shape[-1]
    gh = jnp.dot(h.astype(whh_ref.dtype), whh_ref[...],
                 preferred_element_type=jnp.float32)      # (B, 3H)
    gi = gi_ref[0]                                        # (B, 3H) f32

    r = jax.nn.sigmoid(gi[:, 0:H] + gh[:, 0:H])
    z = jax.nn.sigmoid(gi[:, H:2 * H] + gh[:, H:2 * H])
    n = jnp.tanh(gi[:, 2 * H:] + r * (gh[:, 2 * H:] + bhn_ref[...]))
    h_new = h + (1.0 - z) * (n - h)                       # == (1-z)*n + z*h

    h_scr[...] = h_new
    out_ref[0] = h_new.astype(out_ref.dtype)

    @pl.when(t == pl.num_programs(0) - 1)
    def _():
        hn_ref[...] = h_new


def gru_forward(gi_tb3h, h0, whh_bf16, bhn):
    T, B, H3 = gi_tb3h.shape
    H = h0.shape[-1]

    # VMEM budget: resident weight + double-buffered per-step blocks.
    vmem_est = (whh_bf16.size * whh_bf16.dtype.itemsize   # W_hh^T (resident)
                + 2 * B * H3 * 4                          # gi block (dbl-buf)
                + 2 * B * H * 2                           # out block (dbl-buf)
                + 3 * B * H * 4                           # h0, hn, scratch
                + H * 4)                                  # bhn
    cp_kwargs = {}
    if vmem_est > 24 * 2**20:
        try:
            cap = int(pltpu.get_tpu_info().vmem_capacity_bytes)
        except Exception:  # pragma: no cover - conservative fallback
            cap = 64 * 2**20
        # TODO(synk): at the real H=4096 the bf16 W_hh^T is 96 MiB and cannot
        # be VMEM-resident on v7x (64 MiB); needs core_map sharding of the 3H
        # axis across the two TensorCores or an fp8 weight there.
        cp_kwargs["vmem_limit_bytes"] = int(min(vmem_est * 1.25, cap))

    out, hn = pl.pallas_call(
        gru_kernel,
        grid=(T,),
        in_specs=[
            pl.BlockSpec((1, B, H3), lambda t: (t, 0, 0)),   # gi (per step)
            pl.BlockSpec((B, H), lambda t: (0, 0)),          # h0 (resident)
            pl.BlockSpec((H, H3), lambda t: (0, 0)),         # W_hh^T (resident)
            pl.BlockSpec((1, H), lambda t: (0, 0)),          # b_hn (resident)
        ],
        out_specs=(
            pl.BlockSpec((1, B, H), lambda t: (t, 0, 0)),    # hidden sequence
            pl.BlockSpec((B, H), lambda t: (0, 0)),          # final hidden
        ),
        out_shape=(
            jax.ShapeDtypeStruct((T, B, H), jnp.bfloat16),   # bf16 writeback
            jax.ShapeDtypeStruct((B, H), jnp.float32),
        ),
        scratch_shapes=[pltpu.VMEM((B, H), jnp.float32)],    # carried h
        compiler_params=pltpu.CompilerParams(
            dimension_semantics=("arbitrary",), **cp_kwargs),
    )(gi_tb3h, h0, whh_bf16, bhn)
    return out, hn


# ----------------------------- Model wrapper ---------------------------------
def model_forward(params, x_ids, hidden):
    B, T = x_ids.shape
    H = params["whh_t"].shape[0]

    # Fold the r/z slices of b_hh into b_ih (legal: only b_hn must stay inside
    # the r * (W_hn h + b_hn) term), so the serial loop only adds the n slice.
    bih_folded = params["bih"].at[:, :2 * H].add(params["bhh"][:, :2 * H])
    bhn = params["bhh"][:, 2 * H:]

    # Time-major embedding gather (glue), cast to bf16 for the MXU once here.
    # TODO(synk): embedding gather stays in plain JAX (no clean Pallas gather).
    emb_tm = params["embedding"][x_ids.T].astype(jnp.bfloat16)   # (T, B, E)
    E = emb_tm.shape[-1]

    # Hoisted input projection for ALL timesteps: one big tiled MXU matmul.
    gi = fc_forward(emb_tm.reshape(T * B, E), params["wih_t"], bih_folded)
    gi = gi.reshape(T, B, 3 * H)

    h0 = hidden[0]                                        # (B, H)
    out_tbh, hn = gru_forward(gi, h0, params["whh_t"], bhn)   # out is bf16

    # Logits projection; the (T,B,V)->(B,T,V) transpose is fused into the
    # kernel's output layout (no extra HBM round trip of the logits tensor).
    logits = fc_logits_forward(out_tbh, params["wfc_t"], params["bfc"])
    return logits, hn[None]                               # hidden: (1, B, H)


# ----------------------------- Pure-JAX reference ----------------------------
def ref_forward(params, x_ids, hidden):
    """PyTorch-equation reference with the same mixed-precision scheme
    (bf16 MXU inputs, f32 accumulation / gate math)."""
    B, T = x_ids.shape
    H = params["whh_t"].shape[0]
    emb = params["embedding"][x_ids]                      # (B, T, E) f32
    h0 = hidden[0]

    gi_all = (jnp.dot(emb.reshape(B * T, -1).astype(jnp.bfloat16),
                      params["wih_t"], preferred_element_type=jnp.float32)
              .reshape(B, T, 3 * H) + params["bih"][0])

    def step(h, gi_t):
        gh = jnp.dot(h.astype(jnp.bfloat16), params["whh_t"],
                     preferred_element_type=jnp.float32) + params["bhh"][0]
        r = jax.nn.sigmoid(gi_t[:, :H] + gh[:, :H])
        z = jax.nn.sigmoid(gi_t[:, H:2 * H] + gh[:, H:2 * H])
        n = jnp.tanh(gi_t[:, 2 * H:] + r * gh[:, 2 * H:])
        h_new = (1.0 - z) * n + z * h
        return h_new, h_new

    hn, outs = jax.lax.scan(step, h0, jnp.transpose(gi_all, (1, 0, 2)))
    out = jnp.transpose(outs, (1, 0, 2))                  # (B, T, H)
    logits = (jnp.dot(out.reshape(B * T, H).astype(jnp.bfloat16),
                      params["wfc_t"], preferred_element_type=jnp.float32)
              .reshape(B, T, -1) + params["bfc"][0])
    return logits, hn[None]


# ----------------------------- Main -------------------------------------------
if __name__ == "__main__":
    # Small shapes consistent with the module (scaled down from 128 / 4096).
    vocab_size = 32
    embedding_dim = 32
    rnn_units = 128
    batch = 2
    seq = 8

    key = jax.random.PRNGKey(0)
    k = jax.random.split(key, 8)

    params = {
        "embedding": 0.1 * jax.random.normal(
            k[0], (vocab_size, embedding_dim), jnp.float32),
        # torch weight_ih_l0: (3H, E), weight_hh_l0: (3H, H); stored
        # pre-transposed and cast to bf16 for the MXU.
        "wih_t": (0.1 * jax.random.normal(
            k[1], (embedding_dim, 3 * rnn_units), jnp.float32)
        ).astype(jnp.bfloat16),
        "whh_t": (0.1 * jax.random.normal(
            k[2], (rnn_units, 3 * rnn_units), jnp.float32)
        ).astype(jnp.bfloat16),
        "bih": 0.1 * jax.random.normal(k[3], (1, 3 * rnn_units), jnp.float32),
        "bhh": 0.1 * jax.random.normal(k[4], (1, 3 * rnn_units), jnp.float32),
        # torch fc weight: (V, H); stored pre-transposed (H, V), bf16.
        "wfc_t": (0.1 * jax.random.normal(
            k[5], (rnn_units, vocab_size), jnp.float32)).astype(jnp.bfloat16),
        "bfc": 0.1 * jax.random.normal(k[6], (1, vocab_size), jnp.float32),
    }

    x_ids = jax.random.randint(k[7], (batch, seq), 0, vocab_size, dtype=jnp.int32)
    hidden0 = jnp.zeros((1, batch, rnn_units), jnp.float32)

    logits, hidden = model_forward(params, x_ids, hidden0)
    jax.block_until_ready((logits, hidden))

    ref_logits, ref_hidden = ref_forward(params, x_ids, hidden0)
    assert logits.shape == (batch, seq, vocab_size)
    assert hidden.shape == (1, batch, rnn_units)
    assert jnp.allclose(logits, ref_logits, atol=3e-3, rtol=3e-3)
    assert jnp.allclose(hidden, ref_hidden, atol=3e-3, rtol=3e-3)

    print("KERNEL_OK")
</pallas_src>

<mosaic_0001>
module attributes {stable_mosaic.version = 11 : i64} {
  func.func @fc_kernel(%arg0: i32, %arg1: i32, %arg2: memref<16x32xbf16, #tpu.memory_space<vmem>>, %arg3: memref<32x384xbf16, #tpu.memory_space<vmem>>, %arg4: memref<1x384xf32, #tpu.memory_space<vmem>>, %arg5: memref<16x384xf32, #tpu.memory_space<vmem>>) attributes {dimension_semantics = [#tpu.dimension_semantics<parallel>, #tpu.dimension_semantics<parallel>], iteration_bounds = array<i64: 1, 1>, scalar_prefetch = 0 : i64, scratch_operands = 0 : i64, tpu.core_type = #tpu.core_type<tc>, window_params = [{transform_indices = @transform_0, window_bounds = array<i64: 16, 32>}, {transform_indices = @transform_1, window_bounds = array<i64: 32, 384>}, {transform_indices = @transform_2, window_bounds = array<i64: 1, 384>}, {transform_indices = @transform_3, window_bounds = array<i64: 16, 384>}]} {
    %c0 = arith.constant 0 : index
    %c0_0 = arith.constant 0 : index
    %0 = vector.load %arg2[%c0, %c0_0] : memref<16x32xbf16, #tpu.memory_space<vmem>>, vector<16x32xbf16>
    %c0_1 = arith.constant 0 : index
    %c0_2 = arith.constant 0 : index
    %1 = vector.load %arg3[%c0_1, %c0_2] : memref<32x384xbf16, #tpu.memory_space<vmem>>, vector<32x384xbf16>
    %cst = arith.constant dense<0.000000e+00> : vector<16x384xf32>
    %2 = tpu.matmul %0, %1, %cst {dimension_numbers = #tpu.dot_dimension_numbers<[1], [0], [0], [1], [0, 0, 1, 1], [], []>} : vector<16x32xbf16>, vector<32x384xbf16>, vector<16x384xf32> -> vector<16x384xf32>
    %c0_3 = arith.constant 0 : index
    %c0_4 = arith.constant 0 : index
    %3 = vector.load %arg4[%c0_3, %c0_4] : memref<1x384xf32, #tpu.memory_space<vmem>>, vector<1x384xf32>
    %4 = vector.broadcast %3 : vector<1x384xf32> to vector<16x384xf32>
    %5 = arith.addf %2, %4 : vector<16x384xf32>
    %c0_5 = arith.constant 0 : index
    %c0_6 = arith.constant 0 : index
    %6 = vector.load %arg5[%c0_5, %c0_6] : memref<16x384xf32, #tpu.memory_space<vmem>>, vector<16x384xf32>
    tpu.vector_store %arg5[%c0_5, %c0_6], %5 {strides = array<i32>} : memref<16x384xf32, #tpu.memory_space<vmem>>, vector<16x384xf32>,
    return
  }
  func.func @transform_0(%arg0: i32, %arg1: i32) -> (i32, i32) {
    %c0_i32 = arith.constant 0 : i32
    %c0_i32_0 = arith.constant 0 : i32
    return %arg0, %c0_i32 : i32, i32
  }
  func.func @transform_1(%arg0: i32, %arg1: i32) -> (i32, i32) {
    %c0_i32 = arith.constant 0 : i32
    %c0_i32_0 = arith.constant 0 : i32
    return %c0_i32, %arg1 : i32, i32
  }
  func.func @transform_2(%arg0: i32, %arg1: i32) -> (i32, i32) {
    %c0_i32 = arith.constant 0 : i32
    %c0_i32_0 = arith.constant 0 : i32
    return %c0_i32, %arg1 : i32, i32
  }
  func.func @transform_3(%arg0: i32, %arg1: i32) -> (i32, i32) {
    %c0_i32 = arith.constant 0 : i32
    return %arg0, %arg1 : i32, i32
  }
}

</mosaic_0001>

<bundles_post_ra>
// kernel: tpu_custom_call.1
= control target key start
LH: loop header
LB: loop body
LE: loop exit
PB: predicated region body
PF: predicated region fallthrough
CT: control target
= control target key end

     0   :  { %8 = vsyncpa [#allocation3], 0  ;;  %s371_s0 = inlined_call_operand.hbm [shape: bf16[16,32], index: 0, kind: input, shape index: {}]   ;;  %s372_s1 = inlined_call_operand.hbm [shape: bf16[32,384], index: 1, kind: input, shape index: {}]   ;;  %s373_s2 = inlined_call_operand.vmem [shape: f32[1,384], index: 2, kind: input, shape index: {}]   ;;  %s374_s3 = inlined_call_operand.hbm [shape: f32[16,384], index: 3, kind: output, shape index: {}]  }
   0x1   :  { %9 = vsyncpa [#allocation6], 0 }
   0x2   :  { %10 = vsyncpa [#allocation4], 0  ;;  %s327_s12 = smov [#allocation2]  }
   0x3   :  { %s16_s13 = sshll.u32 %s327_s12, 4  ;;  %s17_s13 = int_to_ptr.vmem [resolvable:$true] %s16_s13 }
   0x4   :  { %s269_s14 = scalar_lea.vmem %s17_s13, 128  ;;  %p274_p1 = scmp.lt.s32.totalorder %s17_s13, %s17_s13 }
   0x5   :  { %p270_p0 = scmp.ne.s32.totalorder %s17_s13, %s269_s14  ;;  %p275_p2 = scmp.lt.s32.totalorder %s269_s14, %s269_s14 }
   0x7   :  { %p276_p3 = por %p275_p2, %p274_p1 }
   0x9   :  { %p277_p4 = pnand %p276_p3, %p270_p0 }
   0xb   :  { %280 = shalt.err (!%p277_p4)
}
   0xc   :  { %s328_s15 = smov 64   ;;  %s329_s16 = smov 4  }
   0xd   :  { %22 = dma.hbm_to_vmem [thread:$0]  %s371_s0, 128, %s17_s13, [#allocation3], %s328_s15, %s328_s15, %s329_s16  }
   0xe   :  { %s330_s19 = smov [#allocation5]  }
   0xf   :  { %s28_s20 = sshll.u32 %s330_s19, 4  ;;  %s29_s20 = int_to_ptr.vmem [resolvable:$true] %s28_s20 }
  0x10   :  { %s289_s21 = scalar_lea.vmem %s29_s20, 768  ;;  %p294_p6 = scmp.lt.s32.totalorder %s29_s20, %s29_s20 }
  0x11   :  { %p290_p5 = scmp.ne.s32.totalorder %s29_s20, %s289_s21  ;;  %p295_p7 = scmp.lt.s32.totalorder %s289_s21, %s289_s21 }
  0x13   :  { %p296_p8 = por %p295_p7, %p294_p6 }
  0x15   :  { %p297_p9 = pnand %p296_p8, %p290_p5 }
  0x17   :  { %300 = shalt.err (!%p297_p9)
}
  0x18   :  { %s331_s22 = smov 192   ;;  %s332_s23 = smov 12  }
  0x19   :  { %34 = dma.hbm_to_vmem [thread:$0]  %s372_s1, 768, %s29_s20, [#allocation6], %s331_s22, %s331_s22, %s332_s23  }
  0x1a   :  { %321 = dma.done.wait [#allocation3], 128  }
  0x1b   :  { %322 = vsyncadd [#allocation3], 4294967168 }
  0x1c   :  { %323 = dma.done.wait [#allocation6], 768  }
  0x1d   :  { %324 = vsyncadd [#allocation6], 4294966528  ;;  %v333_v0 = vmov 0.0   ;;  %vm334_vm0 = vmmov 0   ;;  %v335_v1 = vmov 0   ;;  %v260_v8 = vld [vmem:[#allocation2] sm:$0xff]   ;;  %v56_v9 = vlaneseq }
  0x1e   :  { %232 = vmatprep.subr.bf16.mxu1 %v333_v0  ;;  %236 = vmatprep.mubr.msk.bf16.mxu1 %vm334_vm0, %v333_v0  ;;  %v252_v2 = vld [vmem:[#allocation5 + $0x1c] ss:$12 sps:$4 sm:$0xff]   ;;  %v254_v3 = vld [vmem:[#allocation5 + $0x20] ss:$12 sps:$4 sm:$0xff]   ;;  %v255_v4 = vld [vmem:[#allocation5 + $0x18] ss:$12 sps:$4 sm:$0xff]  }
  0x1f   :  { %144 = vmatprep.mubr.bf16.mxu0 %v335_v1  ;;  %124 = vmatprep.subr.bf16.mxu0 %v252_v2  ;;  %v256_v5 = vld [vmem:[#allocation5 + $0x4] ss:$12 sps:$4 sm:$0xff]   ;;  %v258_v6 = vld [vmem:[#allocation5 + $0x8] ss:$12 sps:$4 sm:$0xff]   ;;  %v259_v7 = vld [vmem:[#allocation5] ss:$12 sps:$4 sm:$0xff]  }
  0x20   :  { %233 = vmatpush3.bf16.msra.mxu1 %v254_v3  ;;  %125 = vmatpush1.bf16.msra.mxu0 %v255_v4  ;;  %vm108_vm1 = vcmask 261120   ;;  %v57_v10 = vshrl.u32 %v56_v9, 7  ;;  %v54_v13 = vld [vmem:[%s373_s2] sm:$0x7]  ;;  %s336_s26 = smov [#allocation7]  }
  0x21   :  { %234 = vmatprep.subr.bf16.mxu1 %v333_v0  ;;  %126 = vmatprep.subr.bf16.mxu0 %v256_v5  ;;  %s207_s27 = sshll.u32 %s336_s26, 4  ;;  %s208_s27 = int_to_ptr.vmem [resolvable:$true] %s207_s27 }
  0x22   :  { %v66_v11 = vsub.s32 2, %v57_v10  ;;  %v58_v12 = vsub.s32 0, %v57_v10  ;;  %v62_v14 = vsub.s32 1, %v57_v10  ;;  %s301_s2 = scalar_lea.vmem %s208_s27, 768  ;;  %p306_p11 = scmp.lt.s32.totalorder %s208_s27, %s208_s27 }
  0x23   :  { %p302_p10 = scmp.ne.s32.totalorder %s208_s27, %s301_s2  ;;  %p307_p12 = scmp.lt.s32.totalorder %s301_s2, %s301_s2 }
  0x24   :  { %235 = vmatpush3.bf16.msra.mxu1 %v258_v6  ;;  %127 = vmatpush1.bf16.msra.mxu0 %v259_v7  ;;  %v67_v15 = vrot.slane %v54_v13, %v66_v11  ;;  %v59_v16 = vrot.slane %v54_v13, %v58_v12  ;;  %v63_v18 = vrot.slane %v54_v13, %v62_v14 }
  0x25   :  { %p308_p13 = por %p307_p12, %p306_p11 }
  0x27   :  { %237 = vmatmul.mubr.msk.bf16.vlgmr.msra.gmra.mxu1 %vm108_vm1, %v260_v8  ;;  %227 = vmatmul.mubr.msk.bf16.vlgmr.msra.gmra.mxu0 %vm108_vm1, %v260_v8  ;;  %p309_p0 = pnand %p308_p13, %p302_p10 }
  0xe7   :  { %v189_v17 = vpop.f32.mrf.mxu1  ;;  %v146_v20 = vpop.f32.mrf.mxu0 }
  0xe8   :  { %v190_v19 = vadd.f32 %v189_v17, %v67_v15  ;;  %v147_v21 = vadd.f32 %v146_v20, %v59_v16 }
  0xe9   :  { %v238_v22 = vpop.f32.mrf.mxu1  ;;  %v148_v23 = vpop.f32.mrf.mxu0 }
  0xea   :  { %198 = vst [vmem:[#allocation7 + $0x10] sm:$0xff] %v190_v19  ;;  %196 = vst [vmem:[#allocation7] sm:$0xff] %v147_v21  ;;  %v149_v24 = vadd.f32 %v148_v23, %v63_v18 }
  0xeb   :  { %v192_v25 = vpop.f32.mrf.mxu1  ;;  %v150_v27 = vpop.f32.mrf.mxu0 }
  0xec   :  { %v193_v26 = vadd.f32 %v192_v25, %v67_v15  ;;  %197 = vst [vmem:[#allocation7 + $0x8] sm:$0xff] %v149_v24  ;;  %v151_v28 = vadd.f32 %v150_v27, %v59_v16 }
  0xed   :  { %v239_v29 = vpop.f32.mrf.mxu1  ;;  %v152_v30 = vpop.f32.mrf.mxu0 }
  0xee   :  { %201 = vst [vmem:[#allocation7 + $0x28] sm:$0xff] %v193_v26  ;;  %199 = vst [vmem:[#allocation7 + $0x18] sm:$0xff] %v151_v28  ;;  %v153_v31 = vadd.f32 %v152_v30, %v63_v18 }
  0xf0   :  { %200 = vst [vmem:[#allocation7 + $0x20] sm:$0xff] %v153_v31 }
  0xf1   :  { %312 = shalt.err (!%p309_p0)
}
  0xf2   :  { %s337_s28 = smov 384   ;;  %s338_s29 = smov 24  }
  0xf3   :  { %213 = dma.vmem_to_hbm [thread:$0]  %s208_s27, 768, %s374_s3, [#allocation4], %s337_s28, %s337_s28, %s338_s29  }
  0xf4   :  { %325 = dma.done.wait [#allocation4], 768  }
  0xf5   :  { %326 = vsyncadd [#allocation4], 4294966528 }
  0xf6   :  { %217 = vsyncpa [#allocation3], 1 }
  0xf7   :  { %218 = vsyncpa [#allocation6], 1 }
  0xf8   :  { %219 = vsyncpa [#allocation4], 1 }

</bundles_post_ra>
